<compile_context>
chip_gen: v7x
topology: tpu7x:2x2x1
jax: 0.10.0
libtpu: 0.0.40
codegen_flags: <defaults>
</compile_context>

<pallas_src>
import jax
import jax.numpy as jnp
from jax.experimental import pallas as pl
from jax.experimental.pallas import tpu as pltpu


def _round_up(v, m):
    return ((v + m - 1) // m) * m


@jax.jit
def eca_forward(x_nchw, conv_w):
    """x_nchw: (B, C, H, W); conv_w: (3,) f32 Conv1d(1,1,k=3,pad=1,bias=False) weight."""
    B, C, H, W = x_nchw.shape
    HW = H * W
    dtype = x_nchw.dtype
    itemsize = dtype.itemsize

    # Sublane/lane aligned padding: channels -> sublane multiple, HW -> 128 multiple.
    sublane = 8 * (4 // itemsize)            # 8 for f32, 16 for bf16
    C_pad = _round_up(C, sublane)
    HW_pad = _round_up(HW, 128)

    x_flat = x_nchw.reshape(B, C, HW)
    if C_pad != C or HW_pad != HW:
        x_flat = jnp.pad(x_flat, ((0, 0), (0, C_pad - C), (0, HW_pad - HW)))

    # Batch tiling: biggest divisor of B whose block fits a ~3 MiB budget, so
    # tiny problems collapse to a single grid step and big ones still pipeline.
    per_elem_bytes = C_pad * HW_pad * itemsize
    budget = 3 * 1024 * 1024
    b_tile = 1
    for d in range(1, B + 1):
        if B % d == 0 and d * per_elem_bytes <= budget:
            b_tile = d
    grid = (B // b_tile,)

    block_bytes = b_tile * per_elem_bytes
    # Double-buffered input + output = 4 * block, plus headroom.
    # TODO(synk): for huge single-image feature maps (esp. v7x 64 MiB VMEM) split
    # into a reduce kernel (B,C means) + an HW-tiled gating kernel.
    vmem_limit = int(max(32 * 1024 * 1024, 4 * block_bytes + (4 << 20)))

    # Lane chunking for streaming the mean + gated multiply from the ref.
    lane_chunk = 128
    for cand in (512, 256, 128):
        if HW_pad % cand == 0:
            lane_chunk = cand
            break
    n_chunks = HW_pad // lane_chunk
    unroll = n_chunks <= 8
    inv_hw = 1.0 / float(HW)                 # true spatial size (padding adds zeros)
    n_rows = b_tile * C_pad

    def kernel(w_ref, x_ref, o_ref):
        # ---- per-channel mean, accumulated in f32, channels stay on sublanes ----
        def sum_body(i, acc):
            off = pl.multiple_of(i * lane_chunk, 128)
            xc = x_ref[:, :, pl.ds(off, lane_chunk)].astype(jnp.float32)
            return acc + jnp.sum(xc, axis=-1, keepdims=True)

        ssum = jax.lax.fori_loop(
            0, n_chunks, sum_body,
            jnp.zeros((b_tile, C_pad, 1), jnp.float32), unroll=unroll)
        mean = ssum * inv_hw                                   # (b_tile, C_pad, 1)

        # ---- Conv1d(k=3, pad=1, no bias) along channels via sublane rolls ----
        mb = jnp.broadcast_to(mean, (b_tile, C_pad, 128)).reshape(n_rows, 128)
        prev = pltpu.roll(mb, shift=1, axis=0)                 # row r <- row r-1
        nxt = pltpu.roll(mb, shift=n_rows - 1, axis=0)         # row r <- row r+1
        prev = prev.reshape(b_tile, C_pad, 128)[:, :, 0:1]
        nxt = nxt.reshape(b_tile, C_pad, 128)[:, :, 0:1]
        cidx = jax.lax.broadcasted_iota(jnp.int32, (b_tile, C_pad, 1), 1)
        prev = jnp.where(cidx == 0, 0.0, prev)                 # zero pad at c = -1
        nxt = jnp.where(cidx == C_pad - 1, 0.0, nxt)           # zero pad at c = C
        z = w_ref[0] * prev + w_ref[1] * mean + w_ref[2] * nxt
        gate = jax.nn.sigmoid(z).astype(o_ref.dtype)           # (b_tile, C_pad, 1)

        # ---- gated copy, streamed in lane-dense chunks straight from the ref ----
        def mul_body(i, carry):
            off = pl.multiple_of(i * lane_chunk, 128)
            o_ref[:, :, pl.ds(off, lane_chunk)] = (
                x_ref[:, :, pl.ds(off, lane_chunk)] * gate)
            return carry

        jax.lax.fori_loop(0, n_chunks, mul_body, 0, unroll=unroll)

    out_pad = pl.pallas_call(
        kernel,
        out_shape=jax.ShapeDtypeStruct((B, C_pad, HW_pad), dtype),
        grid_spec=pltpu.PrefetchScalarGridSpec(
            num_scalar_prefetch=0,
            grid=grid,
            in_specs=[
                pl.BlockSpec(memory_space=pltpu.MemorySpace.SMEM),        # conv weights
                pl.BlockSpec((b_tile, C_pad, HW_pad), lambda b: (b, 0, 0)),
            ],
            out_specs=pl.BlockSpec((b_tile, C_pad, HW_pad), lambda b: (b, 0, 0)),
        ),
        # x_flat is dead after this call inside the jit -> overwrite it in place.
        input_output_aliases={1: 0},
        compiler_params=pltpu.CompilerParams(
            dimension_semantics=("parallel",),
            vmem_limit_bytes=vmem_limit),
    )(conv_w, x_flat)

    return out_pad[:, :C, :HW].reshape(B, C, H, W)


def eca_reference(x_nchw, conv_w):
    """Pure-JAX reference of the PyTorch forward for verification."""
    y = jnp.mean(x_nchw, axis=(2, 3))                                     # (B, C)
    yp = jnp.pad(y, ((0, 0), (1, 1)))                                     # (B, C+2)
    C = y.shape[1]
    z = conv_w[0] * yp[:, 0:C] + conv_w[1] * yp[:, 1:C + 1] + conv_w[2] * yp[:, 2:C + 2]
    g = jax.nn.sigmoid(z)[:, :, None, None]                               # (B, C, 1, 1)
    return x_nchw * g


if __name__ == "__main__":
    key = jax.random.PRNGKey(0)
    kx, kw = jax.random.split(key)

    B, C, H, W = 2, 4, 16, 16
    x = jax.random.normal(kx, (B, C, H, W), dtype=jnp.float32)

    # Deterministic Conv1d(1, 1, kernel_size=3, bias=False) weight init
    # (PyTorch default: U(-1/sqrt(fan_in), 1/sqrt(fan_in)), fan_in = 1*3)
    k_size = 3
    bound = 1.0 / (k_size ** 0.5)
    conv_w = jax.random.uniform(kw, (k_size,), dtype=jnp.float32,
                                minval=-bound, maxval=bound)

    out = eca_forward(x, conv_w)
    out = jax.block_until_ready(out)

    ref = eca_reference(x, conv_w)
    assert out.shape == (B, C, H, W)
    assert jnp.allclose(out, ref, atol=1e-5, rtol=1e-5), "mismatch vs reference"

    print("KERNEL_OK")
</pallas_src>

<mosaic_0001>
module attributes {stable_mosaic.version = 11 : i64} {
  func.func @kernel(%arg0: i32, %arg1: memref<3xf32, #tpu.memory_space<smem>>, %arg2: memref<2x8x256xf32, #tpu.memory_space<vmem>>, %arg3: memref<2x8x256xf32, #tpu.memory_space<vmem>>) attributes {dimension_semantics = [#tpu.dimension_semantics<parallel>], iteration_bounds = array<i64: 1>, scalar_prefetch = 0 : i64, scratch_operands = 0 : i64, tpu.core_type = #tpu.core_type<tc>, window_params = [{transform_indices = @transform_0, window_bounds = array<i64: 3>}, {transform_indices = @transform_1, window_bounds = array<i64: 2, 8, 256>}, {transform_indices = @transform_2, window_bounds = array<i64: 2, 8, 256>}]} {
    %cst = arith.constant 0.000000e+00 : f32
    %0 = vector.broadcast %cst : f32 to vector<2x8x1xf32>
    %c0_i32 = arith.constant 0 : i32
    %c256_i32 = arith.constant 256 : i32
    %1 = arith.muli %c0_i32, %c256_i32 : i32
    %2 = tpu.assume_multiple %1, 128 : i32
    %c0 = arith.constant 0 : index
    %c0_0 = arith.constant 0 : index
    %3 = arith.index_cast %2 : i32 to index
    %4 = vector.load %arg2[%c0, %c0_0, %3] : memref<2x8x256xf32, #tpu.memory_space<vmem>>, vector<2x8x256xf32>
    %cst_1 = arith.constant dense<0.000000e+00> : vector<2x8xf32>
    %5 = vector.multi_reduction <add>, %4, %cst_1 [2] : vector<2x8x256xf32> to vector<2x8xf32>
    %6 = vector.shape_cast %5 : vector<2x8xf32> to vector<2x8x1xf32>
    %7 = arith.addf %0, %6 : vector<2x8x1xf32>
    %c1_i32 = arith.constant 1 : i32
    %cst_2 = arith.constant 3.906250e-03 : f32
    %8 = vector.broadcast %cst_2 : f32 to vector<2x8x1xf32>
    %9 = arith.mulf %7, %8 : vector<2x8x1xf32>
    %10 = vector.shape_cast %9 : vector<2x8x1xf32> to vector<2x8x1xf32>
    %11 = vector.broadcast %10 : vector<2x8x1xf32> to vector<2x8x128xf32>
    %12 = vector.shape_cast %11 : vector<2x8x128xf32> to vector<16x128xf32>
    %c1_i32_3 = arith.constant 1 : i32
    %13 = tpu.dynamic_rotate %12 by %c1_i32_3 dim 0 : vector<16x128xf32>, i32 -> vector<16x128xf32>
    %c15_i32 = arith.constant 15 : i32
    %14 = tpu.dynamic_rotate %12 by %c15_i32 dim 0 : vector<16x128xf32>, i32 -> vector<16x128xf32>
    %15 = vector.shape_cast %13 : vector<16x128xf32> to vector<2x8x128xf32>
    %16 = vector.extract_strided_slice %15 {offsets = [0, 0, 0], sizes = [2, 8, 1], strides = [1, 1, 1]} : vector<2x8x128xf32> to vector<2x8x1xf32>
    %17 = vector.shape_cast %14 : vector<16x128xf32> to vector<2x8x128xf32>
    %18 = vector.extract_strided_slice %17 {offsets = [0, 0, 0], sizes = [2, 8, 1], strides = [1, 1, 1]} : vector<2x8x128xf32> to vector<2x8x1xf32>
    %19 = tpu.iota {dimensions = array<i32: 1>} : vector<2x8x1xi32>
    %c0_i32_4 = arith.constant 0 : i32
    %20 = vector.broadcast %c0_i32_4 : i32 to vector<2x8x1xi32>
    %21 = arith.cmpi eq, %19, %20 : vector<2x8x1xi32>
    %cst_5 = arith.constant 0.000000e+00 : f32
    %22 = vector.broadcast %cst_5 : f32 to vector<2x8x1xf32>
    %23 = arith.select %21, %22, %16 : vector<2x8x1xi1>, vector<2x8x1xf32>
    %c7_i32 = arith.constant 7 : i32
    %24 = vector.broadcast %c7_i32 : i32 to vector<2x8x1xi32>
    %25 = arith.cmpi eq, %19, %24 : vector<2x8x1xi32>
    %cst_6 = arith.constant 0.000000e+00 : f32
    %26 = vector.broadcast %cst_6 : f32 to vector<2x8x1xf32>
    %27 = arith.select %25, %26, %18 : vector<2x8x1xi1>, vector<2x8x1xf32>
    %c0_7 = arith.constant 0 : index
    %28 = memref.load %arg1[%c0_7] : memref<3xf32, #tpu.memory_space<smem>>
    %29 = vector.broadcast %28 : f32 to vector<2x8x1xf32>
    %30 = arith.mulf %29, %23 : vector<2x8x1xf32>
    %c1 = arith.constant 1 : index
    %31 = memref.load %arg1[%c1] : memref<3xf32, #tpu.memory_space<smem>>
    %32 = vector.broadcast %31 : f32 to vector<2x8x1xf32>
    %33 = arith.mulf %32, %9 : vector<2x8x1xf32>
    %34 = arith.addf %30, %33 : vector<2x8x1xf32>
    %c2 = arith.constant 2 : index
    %35 = memref.load %arg1[%c2] : memref<3xf32, #tpu.memory_space<smem>>
    %36 = vector.broadcast %35 : f32 to vector<2x8x1xf32>
    %37 = arith.mulf %36, %27 : vector<2x8x1xf32>
    %38 = arith.addf %34, %37 : vector<2x8x1xf32>
    %39 = arith.negf %38 : vector<2x8x1xf32>
    %40 = math.exp %39 : vector<2x8x1xf32>
    %cst_8 = arith.constant 1.000000e+00 : f32
    %41 = vector.broadcast %cst_8 : f32 to vector<2x8x1xf32>
    %42 = arith.addf %41, %40 : vector<2x8x1xf32>
    %43 = arith.divf %41, %42 : vector<2x8x1xf32>
    %c0_i32_9 = arith.constant 0 : i32
    %c256_i32_10 = arith.constant 256 : i32
    %44 = arith.muli %c0_i32_9, %c256_i32_10 : i32
    %45 = tpu.assume_multiple %44, 128 : i32
    %c0_11 = arith.constant 0 : index
    %c0_12 = arith.constant 0 : index
    %46 = arith.index_cast %45 : i32 to index
    %47 = vector.load %arg2[%c0_11, %c0_12, %46] : memref<2x8x256xf32, #tpu.memory_space<vmem>>, vector<2x8x256xf32>
    %48 = vector.broadcast %43 : vector<2x8x1xf32> to vector<2x8x256xf32>
    %49 = arith.mulf %47, %48 : vector<2x8x256xf32>
    %c0_13 = arith.constant 0 : index
    %c0_14 = arith.constant 0 : index
    %50 = arith.index_cast %45 : i32 to index
    %51 = vector.load %arg3[%c0_13, %c0_14, %50] : memref<2x8x256xf32, #tpu.memory_space<vmem>>, vector<2x8x256xf32>
    tpu.vector_store %arg3[%c0_13, %c0_14, %50], %49 {strides = array<i32>} : memref<2x8x256xf32, #tpu.memory_space<vmem>>, vector<2x8x256xf32>,
    %c1_i32_15 = arith.constant 1 : i32
    return
  }
  func.func @transform_0(%arg0: i32) -> i32 {
    %c0_i32 = arith.constant 0 : i32
    %c0_i32_0 = arith.constant 0 : i32
    return %c0_i32 : i32
  }
  func.func @transform_1(%arg0: i32) -> (i32, i32, i32) {
    %c0_i32 = arith.constant 0 : i32
    %c0_i32_0 = arith.constant 0 : i32
    %c0_i32_1 = arith.constant 0 : i32
    return %arg0, %c0_i32, %c0_i32_0 : i32, i32, i32
  }
  func.func @transform_2(%arg0: i32) -> (i32, i32, i32) {
    %c0_i32 = arith.constant 0 : i32
    %c0_i32_0 = arith.constant 0 : i32
    %c0_i32_1 = arith.constant 0 : i32
    return %arg0, %c0_i32, %c0_i32_0 : i32, i32, i32
  }
}

</mosaic_0001>

<bundles_post_ra>
// kernel: eca_forward.1
= control target key start
LH: loop header
LB: loop body
LE: loop exit
PB: predicated region body
PF: predicated region fallthrough
CT: control target
= control target key end

     0   :  { %7 = vsyncpa [#allocation3], 0  ;;  %s200_s0 = inlined_call_operand.vmem [shape: f32[3], index: 0, kind: input, shape index: {}]   ;;  %s201_s1 = inlined_call_operand.vmem [shape: f32[2,8,256], index: 1, kind: input, shape index: {}, may-alias: {1,2}]   ;;  %s202_s2 = inlined_call_operand.vmem [shape: f32[2,8,256], index: 2, kind: output, shape index: {}, may-alias: {1,2}]  }
   0x1   :  { %s14_s11 = sshll.u32 %s200_s0, 4  ;;  %s15_s11 = int_to_ptr.vmem [resolvable:$true] %s14_s11 }
   0x2   :  { %s123_s12 = scalar_lea.vmem %s15_s11, 16  ;;  %p128_p1 = scmp.lt.s32.totalorder %s15_s11, %s15_s11 }
   0x3   :  { %p124_p0 = scmp.ne.s32.totalorder %s15_s11, %s123_s12  ;;  %p129_p2 = scmp.lt.s32.totalorder %s123_s12, %s123_s12 }
   0x5   :  { %p130_p3 = por %p129_p2, %p128_p1 }
   0x7   :  { %p131_p4 = pnand %p130_p3, %p124_p0 }
   0x9   :  { %134 = shalt.err (!%p131_p4)
}
   0xa   :  { %s137_s13 = smov [#allocation2]  }
   0xb   :  { %17 = dma.vmem_to_smem %s15_s11, 16, %s137_s13, [#allocation3]  }
   0xc   :  { %135 = dma.done.wait [#allocation3], 16  }
   0xd   :  { %136 = vsyncadd [#allocation3], 4294967280 }
   0xe   :  { %23 = sfence }
   0xf   :  { %v160_v0 = vld [vmem:[%s201_s1] sm:$0xff]  ;;  %v165_v1 = vld [vmem:[%s201_s1 + $0x8] sm:$0xff]  ;;  %v170_v2 = vld [vmem:[%s201_s1 + $0x10] sm:$0xff]  ;;  %v138_v6 = vmov 0   ;;  %v40_v7 = vlaneseq  ;;  %s107_s21 = sld [smem:[#allocation2 + $0x1]]  ;;  %s56_s22 = sld [smem:[#allocation2]] }
  0x10   :  { %v28_v3 = vadd.f32 %v165_v1, %v160_v0  ;;  %v177_v4 = vld [vmem:[%s201_s1 + $0x18] sm:$0xff]  ;;  %113 = vset.pattern.permute.xlu1 %v138_v6  ;;  %114 = vset.pattern.permute.xlu0 %v138_v6  ;;  %s181_s23 = sld [smem:[#allocation2 + $0x2]] }
  0x11   :  { %v31_v5 = vadd.f32 %v177_v4, %v170_v2  ;;  %v41_v9 = vshrl.u32 %v40_v7, 7 }
  0x12   :  { %29 = vadd.xlane.f32.xlu0 %v28_v3 }
  0x13   :  { %vm42_vm0 = vcmp.lt.s32.totalorder %v41_v9, 1  ;;  %vm47_vm1 = vcmp.lt.s32.totalorder %v41_v9, 7  ;;  %vm50_vm2 = vcmp.eq.s32.totalorder %v41_v9, 0  ;;  %vm53_vm3 = vcmp.eq.s32.totalorder %v41_v9, 7 }
  0x15   :  { %v61_v17 = vstv %s107_s21  ;;  %v57_v18 = vstv %s56_s22 }
  0x16   :  { %32 = vadd.xlane.f32.xlu0 %v31_v5  ;;  %v67_v19 = vstv %s181_s23 }
  0x9f   :  { %v30_v8 = vpop.xlane.xlu0 %29 }
  0xa0   :  { %v36_v10 = vmul.f32 0.00390625, %v30_v8 }
  0xa2   :  { %v38_v13 = vrot.slane %v36_v10, 7  ;;  %v45_v14 = vrot.slane %v36_v10, 1  ;;  %v62_v28 = vmul.f32 %v61_v17, %v36_v10 }
  0xa3   :  { %v33_v11 = vpop.xlane.xlu0 %32 }
  0xa4   :  { %v37_v12 = vmul.f32 0.00390625, %v33_v11 }
  0xa6   :  { %v39_v15 = vrot.slane %v37_v12, 7  ;;  %v46_v16 = vrot.slane %v37_v12, 1  ;;  %v63_v31 = vmul.f32 %v61_v17, %v37_v12 }
  0xa8   :  { %v43_v20 = vsel %vm42_vm0, %v38_v13, %v39_v15  ;;  %v44_v21 = vsel %vm42_vm0, %v39_v15, %v38_v13  ;;  %v48_v22 = vsel %vm47_vm1, %v45_v14, %v46_v16  ;;  %v49_v23 = vsel %vm47_vm1, %v46_v16, %v45_v14 }
  0xa9   :  { %v51_v24 = vsel %vm50_vm2, 0.0, %v44_v21  ;;  %v52_v25 = vsel %vm50_vm2, 0.0, %v43_v20  ;;  %v54_v26 = vsel %vm53_vm3, 0.0, %v48_v22  ;;  %v55_v27 = vsel %vm53_vm3, 0.0, %v49_v23 }
  0xaa   :  { %v58_v29 = vmul.f32 %v57_v18, %v51_v24  ;;  %v59_v30 = vmul.f32 %v57_v18, %v52_v25  ;;  %v68_v34 = vmul.f32 %v67_v19, %v54_v26  ;;  %v69_v35 = vmul.f32 %v67_v19, %v55_v27 }
  0xac   :  { %v64_v32 = vadd.f32 %v62_v28, %v58_v29  ;;  %v65_v33 = vadd.f32 %v63_v31, %v59_v30 }
  0xae   :  { %v70_v36 = vadd.f32 %v68_v34, %v64_v32  ;;  %v71_v37 = vadd.f32 %v69_v35, %v65_v33 }
  0xb0   :  { %v109_v38 = vmul.f32 -1.442695, %v70_v36  ;;  %v110_v39 = vmul.f32 -1.442695, %v71_v37 }
  0xb2   :  { %115 = vpow2.f32 %v110_v39 }
  0xb3   :  { %117 = vpow2.f32 %v109_v38 }
  0xbc   :  { %v116_v40 = vpop.eup %115 }
  0xbd   :  { %v118_v41 = vpop.eup %117  ;;  %v79_v43 = vadd.f32 1.0, %v116_v40 }
  0xbe   :  { %v78_v42 = vadd.f32 1.0, %v118_v41 }
  0xc0   :  { %119 = vrcp.f32 %v78_v42 }
  0xc1   :  { %121 = vrcp.f32 %v79_v43 }
  0xca   :  { %v120_v44 = vpop.eup %119 }
  0xcb   :  { %86 = vperm.xlu1 %113, %v120_v44   ;;  %v122_v45 = vpop.eup %121 }
  0xcf   :  { %91 = vperm.xlu1 %113, %v122_v45  }
 0x14a   :  { %v87_v46 = vpop.permute.xlu1 %86 }
 0x14b   :  { %v94_v47 = vmul.f32 %v87_v46, %v160_v0  ;;  %v95_v48 = vmul.f32 %v87_v46, %v165_v1 }
 0x14d   :  { %98 = vst [vmem:[%s202_s2] sm:$0xff] %v94_v47  ;;  %99 = vst [vmem:[%s202_s2 + $0x8] sm:$0xff] %v95_v48 }
 0x14e   :  { %v92_v49 = vpop.permute.xlu1 %91 }
 0x14f   :  { %v96_v50 = vmul.f32 %v92_v49, %v170_v2  ;;  %v97_v51 = vmul.f32 %v92_v49, %v177_v4 }
 0x151   :  { %100 = vst [vmem:[%s202_s2 + $0x10] sm:$0xff] %v96_v50  ;;  %101 = vst [vmem:[%s202_s2 + $0x18] sm:$0xff] %v97_v51 }
 0x152   :  { %106 = vsyncpa [#allocation3], 1 }

</bundles_post_ra>
